<compile_context>
chip_gen: v7x
topology: tpu7x:2x2x1
jax: 0.10.0
libtpu: 0.0.40
codegen_flags: <defaults>
</compile_context>

<pallas_src>
import jax
import jax.numpy as jnp
from jax.experimental import pallas as pl
from jax.experimental.pallas import tpu as pltpu


def _round_up(n, m):
    return ((n + m - 1) // m) * m


def _make_hw_kernel(weights_resident):
    """Build the fused highway kernel.

    Refs:
      x_ref:   (tm, D)            input rows (consumed only at layer 0)
      w_ref:   (L, D, 2D) if resident else (1, D, 2D)   bf16 [Wg | Wt], (in, out)
      b_ref:   (L, 1, 2D) if resident else (1, 1, 2D)   f32  [bg | bt]
      o_ref:   (tm, D)            final output (written at last layer only)
      acc_ref: (tm, D) f32 VMEM   resident activation accumulator
    """

    def kernel(x_ref, w_ref, b_ref, o_ref, acc_ref):
        l = pl.program_id(1)
        n_layers = pl.num_programs(1)

        # Initialize the resident fp32 activation from the input at layer 0.
        @pl.when(l == 0)
        def _():
            acc_ref[...] = x_ref[...].astype(jnp.float32)

        x = acc_ref[...]                       # (tm, D) fp32
        d = x.shape[-1]

        wl = l if weights_resident else 0      # static python branch
        w = w_ref[wl]                          # (D, 2D) bf16
        b = b_ref[wl]                          # (1, 2D) f32

        # Single fused MXU pass for gate + transform: (tm, D) @ (D, 2D).
        z = jnp.dot(x.astype(w.dtype), w, preferred_element_type=jnp.float32)
        z = z + b                              # broadcast (1, 2D)

        g = jax.nn.sigmoid(z[:, :d])           # gate half
        h = jnp.maximum(z[:, d:], 0.0)         # transform half (relu)

        # Highway combine: g*h + (1-g)*x  ==  x + g*(h - x)
        acc_ref[...] = x + g * (h - x)

        @pl.when(l == n_layers - 1)
        def _():
            o_ref[...] = acc_ref[...].astype(o_ref.dtype)

    return kernel


def hw_forward(x, w_stack, b_stack, *, tm=None, compute_dtype=jnp.bfloat16):
    """Full highway forward in one pallas_call.

    x:       (N, D)        activations (any float dtype; math is fp32/bf16-MXU)
    w_stack: (L, D, 2D)    per-layer [gate | trans] weights, (in, out) layout
    b_stack: (L, 1, 2D)    per-layer [gate | trans] biases
    """
    N, D = x.shape
    L, D_w, D2 = w_stack.shape
    assert D_w == D and D2 == 2 * D
    assert b_stack.shape == (L, 1, 2 * D)

    # bf16 weights: full-rate MXU + half the weight HBM traffic. Biases stay f32.
    w_stack = w_stack.astype(compute_dtype)
    b_stack = b_stack.astype(jnp.float32)

    # ---- row tile selection -------------------------------------------------
    if tm is None:
        if N <= 256:
            tm = _round_up(N, 8)
        else:
            # >= 2 row tiles (v7x megacore), capped at 512 rows per tile.
            tm = min(512, _round_up((N + 1) // 2, 8))
    tm = max(8, _round_up(int(tm), 8))

    N_pad = _round_up(N, tm)
    x_in = x if N_pad == N else jnp.pad(x, ((0, N_pad - N), (0, 0)))
    n_row_tiles = N_pad // tm

    # ---- weight residency decision & VMEM budget ----------------------------
    itemsize_w = jnp.dtype(compute_dtype).itemsize
    w_bytes = L * D * 2 * D * itemsize_w
    b_bytes = L * 2 * D * 4
    # Conservative budget (2x for pipelining buffers); safe on v7x's 64 MiB VMEM.
    weights_resident = 2 * (w_bytes + b_bytes) <= (16 << 20)

    if weights_resident:
        w_spec = pl.BlockSpec((L, D, 2 * D), lambda i, l: (0, 0, 0))
        b_spec = pl.BlockSpec((L, 1, 2 * D), lambda i, l: (0, 0, 0))
        w_vmem = 2 * (w_bytes + b_bytes)
    else:
        w_spec = pl.BlockSpec((1, D, 2 * D), lambda i, l: (l, 0, 0))
        b_spec = pl.BlockSpec((1, 1, 2 * D), lambda i, l: (l, 0, 0))
        w_vmem = 2 * (D * 2 * D * itemsize_w + 2 * D * 4)

    tile_bytes = tm * D * 4
    # x tile + out tile (double buffered) + acc scratch + z intermediates + weights
    vmem_est = w_vmem + 4 * tile_bytes + tile_bytes + 2 * (tm * 2 * D * 4)

    compiler_kwargs = dict(dimension_semantics=("parallel", "arbitrary"))
    if vmem_est > (28 << 20):
        compiler_kwargs["vmem_limit_bytes"] = int(
            min(vmem_est * 1.3 + (2 << 20), 48 << 20)
        )

    cost = pl.CostEstimate(
        flops=2 * N_pad * D * (2 * D) * L,
        transcendentals=N_pad * D * L,  # sigmoid exp per element per layer
        bytes_accessed=(
            N_pad * D * x.dtype.itemsize * 2
            + (1 if weights_resident else n_row_tiles) * (w_bytes + b_bytes)
        ),
    )

    out = pl.pallas_call(
        _make_hw_kernel(weights_resident),
        out_shape=jax.ShapeDtypeStruct((N_pad, D), x.dtype),
        grid_spec=pltpu.PrefetchScalarGridSpec(
            num_scalar_prefetch=0,
            grid=(n_row_tiles, L),  # rows outer (parallel), layers inner (sequential)
            in_specs=[
                pl.BlockSpec((tm, D), lambda i, l: (i, 0)),   # x row tile
                w_spec,                                        # weights
                b_spec,                                        # biases
            ],
            out_specs=pl.BlockSpec((tm, D), lambda i, l: (i, 0)),
            scratch_shapes=[pltpu.VMEM((tm, D), jnp.float32)],  # fp32 activation acc
        ),
        compiler_params=pltpu.CompilerParams(**compiler_kwargs),
        cost_estimate=cost,
    )(x_in, w_stack, b_stack)

    return out[:N] if N_pad != N else out


def init_hw_params(key, size, num_layers):
    """Deterministic init mimicking torch.nn.Linear default U[-1/sqrt(D), 1/sqrt(D)].

    Returns (w_stack, b_stack) with per-layer weights pre-transposed to (in, out)
    and gate/trans concatenated along the output axis: [Wg | Wt], [bg | bt].
    """
    bound = 1.0 / jnp.sqrt(jnp.float32(size))
    w_layers, b_layers = [], []
    for _ in range(num_layers):
        key, k1, k2, k3, k4 = jax.random.split(key, 5)
        wg = jax.random.uniform(k1, (size, size), jnp.float32, -bound, bound)
        bg = jax.random.uniform(k2, (1, size), jnp.float32, -bound, bound)
        wt = jax.random.uniform(k3, (size, size), jnp.float32, -bound, bound)
        bt = jax.random.uniform(k4, (1, size), jnp.float32, -bound, bound)
        w_layers.append(jnp.concatenate([wg, wt], axis=1))    # (D, 2D)
        b_layers.append(jnp.concatenate([bg, bt], axis=1))    # (1, 2D)
    return jnp.stack(w_layers, axis=0), jnp.stack(b_layers, axis=0)


def hw_forward_ref(x, w_stack, b_stack, compute_dtype=jnp.float32):
    """Pure-JAX reference. compute_dtype controls the matmul input precision."""
    D = x.shape[-1]
    x = x.astype(jnp.float32)
    for l in range(w_stack.shape[0]):
        w = w_stack[l].astype(compute_dtype)          # (D, 2D)
        b = b_stack[l].astype(jnp.float32)            # (1, 2D)
        z = jnp.dot(x.astype(compute_dtype), w,
                    preferred_element_type=jnp.float32) + b
        g = jax.nn.sigmoid(z[:, :D])
        h = jnp.maximum(z[:, D:], 0.0)
        x = x + g * (h - x)
    return x


if __name__ == "__main__":
    key = jax.random.PRNGKey(0)
    size = 128          # hidden_dim (lane-friendly)
    num_layers = 2
    ins_num = 50        # deliberately not a multiple of 8 -> exercises row padding

    key, kx, kp = jax.random.split(key, 3)
    x = jax.random.normal(kx, (ins_num, size), jnp.float32)
    w_stack, b_stack = init_hw_params(kp, size, num_layers)

    out = jax.block_until_ready(hw_forward(x, w_stack, b_stack))
    assert out.shape == (ins_num, size)

    # Matched-precision reference (bf16 matmul inputs, fp32 accumulate/elementwise).
    ref_bf16 = hw_forward_ref(x, w_stack, b_stack, compute_dtype=jnp.bfloat16)
    # Original fp32 module semantics (looser tolerance due to bf16 MXU inputs).
    ref_f32 = hw_forward_ref(x, w_stack, b_stack, compute_dtype=jnp.float32)

    assert jnp.allclose(out, ref_bf16, atol=5e-3, rtol=5e-3), "mismatch vs bf16 ref"
    assert jnp.allclose(out, ref_f32, atol=1e-1, rtol=1e-1), "mismatch vs fp32 ref"

    print("KERNEL_OK")
</pallas_src>

<mosaic_0001>
module attributes {stable_mosaic.version = 11 : i64} {
  func.func @kernel(%arg0: i32, %arg1: i32, %arg2: memref<56x128xf32, #tpu.memory_space<vmem>>, %arg3: memref<2x128x256xbf16, #tpu.memory_space<vmem>>, %arg4: memref<2x1x256xf32, #tpu.memory_space<vmem>>, %arg5: memref<56x128xf32, #tpu.memory_space<vmem>>, %arg6: memref<56x128xf32, #tpu.memory_space<vmem>>) attributes {dimension_semantics = [#tpu.dimension_semantics<parallel>, #tpu.dimension_semantics<arbitrary>], iteration_bounds = array<i64: 1, 2>, scalar_prefetch = 0 : i64, scratch_operands = 1 : i64, tpu.core_type = #tpu.core_type<tc>, window_params = [{transform_indices = @transform_0, window_bounds = array<i64: 56, 128>}, {pipeline_mode = #tpu.pipeline_mode<synchronous>, transform_indices = @transform_1, window_bounds = array<i64: 2, 128, 256>}, {pipeline_mode = #tpu.pipeline_mode<synchronous>, transform_indices = @transform_2, window_bounds = array<i64: 2, 1, 256>}, {transform_indices = @transform_3, window_bounds = array<i64: 56, 128>}]} {
    %c0_i32 = arith.constant 0 : i32
    %0 = arith.cmpi eq, %arg1, %c0_i32 : i32
    %1 = arith.extui %0 : i1 to i32
    %c0_i32_0 = arith.constant 0 : i32
    %2 = arith.cmpi ne, %1, %c0_i32_0 : i32
    scf.if %2 {
      %c0_11 = arith.constant 0 : index
      %c0_12 = arith.constant 0 : index
      %30 = vector.load %arg2[%c0_11, %c0_12] : memref<56x128xf32, #tpu.memory_space<vmem>>, vector<56x128xf32>
      %c0_13 = arith.constant 0 : index
      %c0_14 = arith.constant 0 : index
      %31 = vector.load %arg6[%c0_13, %c0_14] : memref<56x128xf32, #tpu.memory_space<vmem>>, vector<56x128xf32>
      tpu.vector_store %arg6[%c0_13, %c0_14], %30 {strides = array<i32>} : memref<56x128xf32, #tpu.memory_space<vmem>>, vector<56x128xf32>,
    } else {
    }
    %c0 = arith.constant 0 : index
    %c0_1 = arith.constant 0 : index
    %3 = vector.load %arg6[%c0, %c0_1] : memref<56x128xf32, #tpu.memory_space<vmem>>, vector<56x128xf32>
    %4 = arith.index_cast %arg1 : i32 to index
    %c0_2 = arith.constant 0 : index
    %c0_3 = arith.constant 0 : index
    %5 = vector.load %arg3[%4, %c0_2, %c0_3] : memref<2x128x256xbf16, #tpu.memory_space<vmem>>, vector<1x128x256xbf16>
    %6 = vector.shape_cast %5 : vector<1x128x256xbf16> to vector<128x256xbf16>
    %7 = arith.index_cast %arg1 : i32 to index
    %c0_4 = arith.constant 0 : index
    %c0_5 = arith.constant 0 : index
    %8 = vector.load %arg4[%7, %c0_4, %c0_5] : memref<2x1x256xf32, #tpu.memory_space<vmem>>, vector<1x1x256xf32>
    %9 = vector.shape_cast %8 : vector<1x1x256xf32> to vector<1x256xf32>
    %10 = arith.truncf %3 : vector<56x128xf32> to vector<56x128xbf16>
    %cst = arith.constant dense<0.000000e+00> : vector<56x256xf32>
    %11 = tpu.matmul %10, %6, %cst {dimension_numbers = #tpu.dot_dimension_numbers<[1], [0], [0], [1], [0, 0, 1, 1], [], []>} : vector<56x128xbf16>, vector<128x256xbf16>, vector<56x256xf32> -> vector<56x256xf32>
    %12 = vector.broadcast %9 : vector<1x256xf32> to vector<56x256xf32>
    %13 = arith.addf %11, %12 : vector<56x256xf32>
    %14 = vector.extract_strided_slice %13 {offsets = [0, 0], sizes = [56, 128], strides = [1, 1]} : vector<56x256xf32> to vector<56x128xf32>
    %15 = arith.negf %14 : vector<56x128xf32>
    %16 = math.exp %15 : vector<56x128xf32>
    %cst_6 = arith.constant 1.000000e+00 : f32
    %17 = vector.broadcast %cst_6 : f32 to vector<56x128xf32>
    %18 = arith.addf %17, %16 : vector<56x128xf32>
    %19 = arith.divf %17, %18 : vector<56x128xf32>
    %20 = vector.extract_strided_slice %13 {offsets = [0, 128], sizes = [56, 128], strides = [1, 1]} : vector<56x256xf32> to vector<56x128xf32>
    %cst_7 = arith.constant 0.000000e+00 : f32
    %21 = vector.broadcast %cst_7 : f32 to vector<56x128xf32>
    %22 = arith.maximumf %20, %21 : vector<56x128xf32>
    %23 = arith.subf %22, %3 : vector<56x128xf32>
    %24 = arith.mulf %19, %23 : vector<56x128xf32>
    %25 = arith.addf %3, %24 : vector<56x128xf32>
    %c0_8 = arith.constant 0 : index
    %c0_9 = arith.constant 0 : index
    %26 = vector.load %arg6[%c0_8, %c0_9] : memref<56x128xf32, #tpu.memory_space<vmem>>, vector<56x128xf32>
    tpu.vector_store %arg6[%c0_8, %c0_9], %25 {strides = array<i32>} : memref<56x128xf32, #tpu.memory_space<vmem>>, vector<56x128xf32>,
    %c1_i32 = arith.constant 1 : i32
    %27 = arith.cmpi eq, %arg1, %c1_i32 : i32
    %28 = arith.extui %27 : i1 to i32
    %c0_i32_10 = arith.constant 0 : i32
    %29 = arith.cmpi ne, %28, %c0_i32_10 : i32
    scf.if %29 {
      %c0_11 = arith.constant 0 : index
      %c0_12 = arith.constant 0 : index
      %30 = vector.load %arg6[%c0_11, %c0_12] : memref<56x128xf32, #tpu.memory_space<vmem>>, vector<56x128xf32>
      %c0_13 = arith.constant 0 : index
      %c0_14 = arith.constant 0 : index
      %31 = vector.load %arg5[%c0_13, %c0_14] : memref<56x128xf32, #tpu.memory_space<vmem>>, vector<56x128xf32>
      tpu.vector_store %arg5[%c0_13, %c0_14], %30 {strides = array<i32>} : memref<56x128xf32, #tpu.memory_space<vmem>>, vector<56x128xf32>,
    } else {
    }
    return
  }
  func.func @transform_0(%arg0: i32, %arg1: i32) -> (i32, i32) {
    %c0_i32 = arith.constant 0 : i32
    %c0_i32_0 = arith.constant 0 : i32
    return %arg0, %c0_i32 : i32, i32
  }
  func.func @transform_1(%arg0: i32, %arg1: i32) -> (i32, i32, i32) {
    %c0_i32 = arith.constant 0 : i32
    %c0_i32_0 = arith.constant 0 : i32
    %c0_i32_1 = arith.constant 0 : i32
    %c0_i32_2 = arith.constant 0 : i32
    return %c0_i32, %c0_i32_0, %c0_i32_1 : i32, i32, i32
  }
  func.func @transform_2(%arg0: i32, %arg1: i32) -> (i32, i32, i32) {
    %c0_i32 = arith.constant 0 : i32
    %c0_i32_0 = arith.constant 0 : i32
    %c0_i32_1 = arith.constant 0 : i32
    %c0_i32_2 = arith.constant 0 : i32
    return %c0_i32, %c0_i32_0, %c0_i32_1 : i32, i32, i32
  }
  func.func @transform_3(%arg0: i32, %arg1: i32) -> (i32, i32) {
    %c0_i32 = arith.constant 0 : i32
    %c0_i32_0 = arith.constant 0 : i32
    return %arg0, %c0_i32 : i32, i32
  }
}

</mosaic_0001>

<bundles_post_ra>
// kernel: tpu_custom_call.1
= control target key start
LH: loop header
LB: loop body
LE: loop exit
PB: predicated region body
PF: predicated region fallthrough
CT: control target
= control target key end

     0   :  { %8 = vsyncpa [#allocation4], 0  ;;  %s1088_s0 = inlined_call_operand.hbm [shape: f32[56,128], index: 0, kind: input, shape index: {}]   ;;  %s1089_s1 = inlined_call_operand.hbm [shape: bf16[2,128,256], index: 1, kind: input, shape index: {}]   ;;  %s1090_s2 = inlined_call_operand.vmem [shape: f32[2,1,256], index: 2, kind: input, shape index: {}]   ;;  %s1091_s3 = inlined_call_operand.hbm [shape: f32[56,128], index: 3, kind: output, shape index: {}]  }
   0x1   :  { %9 = vsyncpa [#allocation7], 0 }
   0x2   :  { %10 = vsyncpa [#allocation5], 0  ;;  %s892_s12 = smov 0   ;;  %s894_s13 = smov 0  }
   0x3   :  { %s896_s14 = smov 0  }
   0x4 LB: > { %s581_s15 = sadd.s32 4294967295, %s862_s14   ;;  %s25_s16 = sadd.s32 1, %s858_s13  ;;  %s862_s14 = sphi %s896_s14, %s16_s14   ;;  %s858_s13 = sphi %s894_s13, %s1102_s13   ;;  %s854_s12 = sphi %s892_s12, %s1101_s12  }
   0x5   : > { %p26_p0 = scmp.ge.s32.totalorder %s25_s16, 2  ;;  %p582_p1 = scmp.ge.s32.totalorder %s862_s14, 1 }
   0x6   : > { %p127_p2 = scmp.lt.s32.totalorder %s862_s14, 3  ;;  %p919_p4 = scmp.eq.s32.totalorder %s581_s15, 0 }
   0x7   : > { %s1104_s16 = smov (%p26_p0, %s25_s16), 0  ;;  %s864_s19 = smov [#allocation3]  }
   0x8   : > { %p913_p3 = pnand %p582_p1, %p127_p2  ;;  %s142_s20 = sshll.u32 %s864_s19, 4  ;;  %s143_s20 = int_to_ptr.vmem [resolvable:$true] %s142_s20 }
   0x9   : > { %s1096_s18 = scalar_select %p919_p4, 1, 0 }
   0xa   : > { %s1095_s17 = scalar_select %p913_p3, 1, 0 }
   0xb   : > { %p649_p5 = pneg %p913_p3  ;;  %s865_s22 = smov [#allocation6]  }
   0xc   : > { %s155_s23 = sshll.u32 %s865_s22, 4  ;;  %s746_s26 = scalar_lea.hbm %s1088_s0, 896  ;;  %s931_s23 = int_to_ptr.vmem [resolvable:$true] %s155_s23 }
   0xd   : > { %p927_p6 = pnand %p919_p4, %p649_p5  ;;  %p747_p7 = scmp.ne.s32.totalorder %s1088_s0, %s746_s26 }
   0xe   : > { %p753_p11 = scmp.lt.u32.totalorder %s746_s26, %s1088_s0 }
   0xf   : > { %p748_p8 = pneg %p927_p6 }
  0x11   : > { %p749_p9 = pnand %p748_p8, %p747_p7 }
  0x13   : > { %p750_p10 = pneg %p749_p9 }
  0x15   : > { %p755_p12 = pnand %p753_p11, %p750_p10 }
  0x17   : > { %758 = shalt.err (!%p755_p12)
}
  0x18   : > { %s759_s4 = scalar_lea.vmem %s143_s20, 896  ;;  %p767_p2 = scmp.lt.s32.totalorder %s143_s20, %s143_s20 }
  0x19   : > { %p760_p13 = scmp.ne.s32.totalorder %s143_s20, %s759_s4  ;;  %p768_p5 = scmp.lt.s32.totalorder %s759_s4, %s759_s4 }
  0x1b   : > { %p762_p0 = pnand %p760_p13, %p748_p8  ;;  %p769_p4 = por %p768_p5, %p767_p2 }
  0x1d   : > { %p763_p1 = pneg %p762_p0 }
  0x1f   : > { %p770_p3 = pnand %p769_p4, %p763_p1 }
  0x21   : > { %773 = shalt.err (!%p770_p3)
}
  0x22   : > { %s866_s5 = smov 128   ;;  %s867_s6 = smov 8  }
  0x23   : > { %652 = dma.hbm_to_vmem [thread:$0]  (!%p927_p6), %s1088_s0, 896, %s143_s20, [#allocation4], %s866_s5, %s866_s5, %s867_s6  }
  0x24   : > { %s774_s11 = scalar_lea.hbm %s1089_s1, 4096 }
  0x25   : > { %p775_p7 = scmp.ne.s32.totalorder %s1089_s1, %s774_s11  ;;  %p781_p9 = scmp.lt.u32.totalorder %s774_s11, %s1089_s1 }
  0x27   : > { %p777_p3 = pnand %p775_p7, %p748_p8 }
  0x29   : > { %p778_p4 = pneg %p777_p3 }
  0x2b   : > { %p783_p10 = pnand %p781_p9, %p778_p4 }
  0x2d   : > { %786 = shalt.err (!%p783_p10)
}
  0x2e   : > { %s787_s20 = scalar_lea.vmem %s931_s23, 4096  ;;  %p795_p0 = scmp.lt.s32.totalorder %s931_s23, %s931_s23 }
  0x2f   : > { %p788_p11 = scmp.ne.s32.totalorder %s931_s23, %s787_s20  ;;  %p796_p1 = scmp.lt.s32.totalorder %s787_s20, %s787_s20 }
  0x31   : > { %p790_p12 = pnand %p788_p11, %p748_p8  ;;  %p797_p2 = por %p796_p1, %p795_p0 }
  0x33   : > { %p791_p13 = pneg %p790_p12 }
  0x35   : > { %p798_p5 = pnand %p797_p2, %p791_p13 }
  0x37   : > { %801 = shalt.err (!%p798_p5)
}
  0x38   : > { %655 = dma.hbm_to_vmem [thread:$0]  (!%p927_p6), %s1089_s1, 4096, %s931_s23, [#allocation7], %s866_s5, %s866_s5, %s867_s6  }
  0x39   : > { %p1098_p7 = scmp.ne.s32.totalorder %s1095_s17, 0 }
  0x3a   : > { %p1099_p3 = scmp.ne.s32.totalorder (!%p1098_p7), %s1096_s18, 0 }
  0x3b   : > { %174 = sbr.rel (%p1098_p7) target bundleno = 402 (0x192), region = 32 }
  0x42   : > { %841 = dma.done.wait (%p1099_p3), [#allocation4], 896  }
  0x43   : > { %843 = vsyncadd (%p1099_p3), [#allocation4], 4294966400 }
  0x44   : > { %845 = dma.done.wait (%p1099_p3), [#allocation7], 4096  }
  0x45   : > { %847 = vsyncadd (%p1099_p3), [#allocation7], 4294963200  ;;  %p588_p8 = scmp.ne.s32.totalorder %s854_s12, 0 }
  0x46   : > { %v199_v0 = vld [vmem:[#allocation3] sm:$0xff] (!%p588_p8)  ;;  %v200_v1 = vld [vmem:[#allocation3 + $0x8] sm:$0xff] (!%p588_p8)  ;;  %v201_v2 = vld [vmem:[#allocation3 + $0x10] sm:$0xff] (!%p588_p8) }
  0x47   : > { %198 = sbr.rel (%p588_p8) target bundleno = 78 (0x4e), region = 44  ;;  %206 = vst [vmem:[#allocation2] sm:$0xff] (!%p588_p8), %v199_v0  ;;  %207 = vst [vmem:[#allocation2 + $0x8] sm:$0xff] (!%p588_p8), %v200_v1  ;;  %v202_v3 = vld [vmem:[#allocation3 + $0x18] sm:$0xff] (!%p588_p8)  ;;  %v203_v4 = vld [vmem:[#allocation3 + $0x20] sm:$0xff] (!%p588_p8) }
  0x48   : > { %208 = vst [vmem:[#allocation2 + $0x10] sm:$0xff] (!%p588_p8), %v201_v2  ;;  %v204_v5 = vld [vmem:[#allocation3 + $0x28] sm:$0xff] (!%p588_p8)  ;;  %209 = vst [vmem:[#allocation2 + $0x18] sm:$0xff] (!%p588_p8), %v202_v3  ;;  %v205_v6 = vld [vmem:[#allocation3 + $0x30] sm:$0xff] (!%p588_p8) }
  0x49   : > { %210 = vst [vmem:[#allocation2 + $0x20] sm:$0xff] (!%p588_p8), %v203_v4  ;;  %211 = vst [vmem:[#allocation2 + $0x28] sm:$0xff] (!%p588_p8), %v204_v5 }
  0x4a   : > { %212 = vst [vmem:[#allocation2 + $0x30] sm:$0xff] (!%p588_p8), %v205_v6 }
  0x4e PF: > { %s620_s17 = sshll.u32 %s854_s12, 7  ;;  %v868_v7 = vmov 0   ;;  %v1009_v23 = vld [vmem:[#allocation2] sm:$0xff]  ;;  %v1011_v24 = vld [vmem:[#allocation2 + $0x8] sm:$0xff]  ;;  %v247_v35 = vlaneseq  ;;  %s591_s21 = sshll.u32 %s854_s12, 1 }
  0x4f   : > { %369 = vmatprep.mubr.bf16.mxu0 %v868_v7  ;;  %389 = vmatprep.mubr.bf16.mxu1 %v868_v7  ;;  %s992_s18 = scalar_lea.vmem [#allocation6], %s620_s17  ;;  %v242_v28 = vpack.c.bf16 %v1011_v24, %v1009_v23  ;;  %v1022_v30 = vld [vmem:[#allocation2 + $0x10] sm:$0xff]  ;;  %v1024_v31 = vld [vmem:[#allocation2 + $0x18] sm:$0xff]  ;;  %s240_s29 = scalar_lea.vmem %s1090_s2, %s591_s21 }
  0x50   : > { %v694_v8 = vld [vmem:[%s992_s18 + $0x4] ss:$8 sps:$4 sm:$0xff]   ;;  %v696_v9 = vld [vmem:[%s992_s18] ss:$8 sps:$4 sm:$0xff]   ;;  %v697_v10 = vld [vmem:[%s992_s18 + $0x14] ss:$8 sps:$4 sm:$0xff]   ;;  %v243_v33 = vpack.c.bf16 %v1024_v31, %v1022_v30 }
  0x51   : > { %337 = vmatprep.subr.bf16.mxu0 %v694_v8  ;;  %621 = vmatprep.subr.bf16.mxu1 %v694_v8  ;;  %v699_v11 = vld [vmem:[%s992_s18 + $0x10] ss:$8 sps:$4 sm:$0xff]   ;;  %v700_v12 = vld [vmem:[%s992_s18 + $0x24] ss:$8 sps:$4 sm:$0xff]   ;;  %v702_v13 = vld [vmem:[%s992_s18 + $0x20] ss:$8 sps:$4 sm:$0xff]  }
  0x52   : > { %338 = vmatpush1.bf16.msra.mxu0 %v696_v9  ;;  %629 = vmatpush1.bf16.msra.mxu1 %v696_v9  ;;  %v703_v14 = vld [vmem:[%s992_s18 + $0x34] ss:$8 sps:$4 sm:$0xff]   ;;  %v705_v15 = vld [vmem:[%s992_s18 + $0x30] ss:$8 sps:$4 sm:$0xff]   ;;  %v706_v16 = vld [vmem:[%s992_s18 + $0x44] ss:$8 sps:$4 sm:$0xff]  }
  0x53   : > { %339 = vmatprep.subr.bf16.mxu0 %v697_v10  ;;  %622 = vmatprep.subr.bf16.mxu1 %v697_v10  ;;  %v708_v17 = vld [vmem:[%s992_s18 + $0x40] ss:$8 sps:$4 sm:$0xff]   ;;  %v709_v18 = vld [vmem:[%s992_s18 + $0x54] ss:$8 sps:$4 sm:$0xff]   ;;  %v711_v19 = vld [vmem:[%s992_s18 + $0x50] ss:$8 sps:$4 sm:$0xff]  }
  0x54   : > { %v712_v20 = vld [vmem:[%s992_s18 + $0x64] ss:$8 sps:$4 sm:$0xff]   ;;  %v714_v21 = vld [vmem:[%s992_s18 + $0x60] ss:$8 sps:$4 sm:$0xff]   ;;  %v715_v22 = vld [vmem:[%s992_s18 + $0x74] ss:$8 sps:$4 sm:$0xff]  }
  0x55   : > { %v717_v25 = vld [vmem:[%s992_s18 + $0x70] ss:$8 sps:$4 sm:$0xff]   ;;  %v1014_v26 = vld [vmem:[#allocation2 + $0x20] sm:$0xff]  ;;  %v1016_v27 = vld [vmem:[#allocation2 + $0x28] sm:$0xff]  ;;  %v248_v36 = vshrl.u32 %v247_v35, 7  ;;  %p615_p6 = scmp.ne.s32.totalorder %s854_s12, 1 }
  0x56   : > { %340 = vmatpush1.bf16.msra.mxu0 %v699_v11  ;;  %630 = vmatpush1.bf16.msra.mxu1 %v699_v11  ;;  %v244_v29 = vpack.c.bf16 %v1016_v27, %v1014_v26  ;;  %v1026_v32 = vld [vmem:[#allocation2 + $0x30] sm:$0xff]  ;;  %v241_v38 = vld [vmem:[%s240_s29] sm:$0x3] }
  0x57   : > { %341 = vmatprep.subr.bf16.mxu0 %v700_v12  ;;  %623 = vmatprep.subr.bf16.mxu1 %v700_v12  ;;  %v245_v34 = vpack.c.bf16 %v1026_v32, %v1026_v32  ;;  %v249_v37 = vsub.s32 0, %v248_v36  ;;  %v253_v62 = vsub.s32 1, %v248_v36 }
  0x59   : > { %v250_v39 = vrot.slane %v241_v38, %v249_v37  ;;  %v254_v8 = vrot.slane %v241_v38, %v253_v62 }
  0x5a   : > { %342 = vmatpush1.bf16.msra.mxu0 %v702_v13  ;;  %631 = vmatpush1.bf16.msra.mxu1 %v702_v13 }
  0x5b   : > { %343 = vmatprep.subr.bf16.mxu0 %v703_v14  ;;  %624 = vmatprep.subr.bf16.mxu1 %v703_v14 }
  0x5e   : > { %344 = vmatpush1.bf16.msra.mxu0 %v705_v15  ;;  %632 = vmatpush1.bf16.msra.mxu1 %v705_v15 }
  0x5f   : > { %345 = vmatprep.subr.bf16.mxu0 %v706_v16  ;;  %625 = vmatprep.subr.bf16.mxu1 %v706_v16 }
  0x62   : > { %346 = vmatpush1.bf16.msra.mxu0 %v708_v17  ;;  %633 = vmatpush1.bf16.msra.mxu1 %v708_v17 }
  0x63   : > { %347 = vmatprep.subr.bf16.mxu0 %v709_v18  ;;  %626 = vmatprep.subr.bf16.mxu1 %v709_v18 }
  0x66   : > { %348 = vmatpush1.bf16.msra.mxu0 %v711_v19  ;;  %634 = vmatpush1.bf16.msra.mxu1 %v711_v19 }
  0x67   : > { %349 = vmatprep.subr.bf16.mxu0 %v712_v20  ;;  %627 = vmatprep.subr.bf16.mxu1 %v712_v20 }
  0x6a   : > { %350 = vmatpush1.bf16.msra.mxu0 %v714_v21  ;;  %635 = vmatpush1.bf16.msra.mxu1 %v714_v21 }
  0x6b   : > { %351 = vmatprep.subr.bf16.mxu0 %v715_v22  ;;  %628 = vmatprep.subr.bf16.mxu1 %v715_v22 }
  0x6e   : > { %352 = vmatpush1.bf16.msra.mxu0 %v717_v25  ;;  %636 = vmatpush1.bf16.msra.mxu1 %v717_v25 }
  0x71   : > { %370 = vmatmul.mubr.bf16.vlgmr.msra.gmra.mrb[0].mxu0 %v242_v28  ;;  %390 = vmatmul.mubr.bf16.vlgmr.msra.gmra.mrb[0].mxu1 %v244_v29 }
  0x72   : > { %379 = vmatprep.mubr.bf16.mxu0 %v868_v7  ;;  %399 = vmatprep.mubr.bf16.mxu1 %v868_v7 }
  0x79   : > { %380 = vmatmul.mubr.bf16.gmra.mrb[4].mxu0 %v243_v33  ;;  %400 = vmatmul.mubr.bf16.gmra.mrb[4].mxu1 %v245_v34 }
 0x144   : > { %v371_v40 = vpop.f32.mrb[0].mxu0  ;;  %v391_v41 = vpop.f32.mrb[0].mxu1 }
 0x145   : > { %v372_v42 = vadd.f32 %v371_v40, %v250_v39  ;;  %v392_v43 = vadd.f32 %v391_v41, %v250_v39  ;;  %v373_v44 = vpop.f32.mrb[1].mxu0  ;;  %v393_v45 = vpop.f32.mrb[1].mxu1 }
 0x146   : > { %v375_v46 = vpop.f32.mrb[2].mxu0  ;;  %v395_v47 = vpop.f32.mrb[2].mxu1  ;;  %v374_v15 = vadd.f32 %v373_v44, %v254_v8  ;;  %v394_v17 = vadd.f32 %v393_v45, %v254_v8 }
 0x147   : > { %v608_v48 = vmul.f32 -1.442695, %v372_v42  ;;  %v612_v49 = vmul.f32 -1.442695, %v392_v43  ;;  %v376_v50 = vadd.f32 %v375_v46, %v250_v39  ;;  %v396_v51 = vadd.f32 %v395_v47, %v250_v39  ;;  %v377_v52 = vpop.f32.mrb[3].mxu0  ;;  %v397_v53 = vpop.f32.mrb[3].mxu1 }
 0x148   : > { %v378_v18 = vadd.f32 %v377_v52, %v254_v8  ;;  %v398_v19 = vadd.f32 %v397_v53, %v254_v8  ;;  %v450_v21 = vmax.f32 %v374_v15, 0.0  ;;  %v454_v25 = vmax.f32 %v394_v17, 0.0 }
 0x149   : > { %718 = vpow2.f32 %v608_v48  ;;  %v609_v54 = vmul.f32 -1.442695, %v376_v50  ;;  %v613_v55 = vmul.f32 -1.442695, %v396_v51 }
 0x14a   : > { %720 = vpow2.f32 %v612_v49  ;;  %v451_v33 = vmax.f32 %v378_v18, 0.0  ;;  %v455_v35 = vmax.f32 %v398_v19, 0.0  ;;  %v457_v37 = vsub.f32 %v450_v21, %v1009_v23 }
 0x14b   : > { %722 = vpow2.f32 %v609_v54  ;;  %v461_v40 = vsub.f32 %v454_v25, %v1014_v26 }
 0x14c   : > { %724 = vpow2.f32 %v613_v55  ;;  %v381_v56 = vpop.f32.mrb[4].mxu0  ;;  %v401_v57 = vpop.f32.mrb[4].mxu1  ;;  %v458_v44 = vsub.f32 %v451_v33, %v1011_v24  ;;  %v462_v48 = vsub.f32 %v455_v35, %v1016_v27 }
 0x14d   : > { %v382_v58 = vadd.f32 %v381_v56, %v250_v39  ;;  %v402_v59 = vadd.f32 %v401_v57, %v250_v39  ;;  %v383_v60 = vpop.f32.mrb[5].mxu0  ;;  %v403_v61 = vpop.f32.mrb[5].mxu1 }
 0x14e   : > { %v385_v63 = vpop.f32.mrb[6].mxu0  ;;  %v405_v0 = vpop.f32.mrb[6].mxu1  ;;  %v384_v38 = vadd.f32 %v383_v60, %v254_v8  ;;  %v404_v41 = vadd.f32 %v403_v61, %v254_v8 }
 0x14f   : > { %v610_v1 = vmul.f32 -1.442695, %v382_v58  ;;  %v614_v2 = vmul.f32 -1.442695, %v402_v59  ;;  %v386_v3 = vadd.f32 %v385_v63, %v250_v39  ;;  %v387_v4 = vpop.f32.mrb[7].mxu0  ;;  %v406_v5 = vpop.f32.mrb[7].mxu1 }
 0x150   : > { %v388_v45 = vadd.f32 %v387_v4, %v254_v8  ;;  %v452_v52 = vmax.f32 %v384_v38, 0.0  ;;  %v456_v55 = vmax.f32 %v404_v41, 0.0 }
 0x151   : > { %726 = vpow2.f32 %v610_v1  ;;  %v611_v6 = vmul.f32 -1.442695, %v386_v3 }
 0x152   : > { %728 = vpow2.f32 %v614_v2  ;;  %v453_v57 = vmax.f32 %v388_v45, 0.0  ;;  %v459_v59 = vsub.f32 %v452_v52, %v1022_v30 }
 0x153   : > { %v719_v7 = vpop.eup %718  ;;  %730 = vpow2.f32 %v611_v6 }
 0x154   : > { %v721_v9 = vpop.eup %720  ;;  %v429_v10 = vadd.f32 1.0, %v719_v7 }
 0x155   : > { %v723_v11 = vpop.eup %722  ;;  %v433_v12 = vadd.f32 1.0, %v721_v9 }
 0x156   : > { %v725_v13 = vpop.eup %724  ;;  %732 = vrcp.f32 %v429_v10  ;;  %v430_v14 = vadd.f32 1.0, %v723_v11 }
 0x157   : > { %734 = vrcp.f32 %v433_v12  ;;  %v434_v16 = vadd.f32 1.0, %v725_v13 }
 0x158   : > { %736 = vrcp.f32 %v430_v14 }
 0x159   : > { %738 = vrcp.f32 %v434_v16 }
 0x15b   : > { %v727_v20 = vpop.eup %726 }
 0x15c   : > { %v729_v22 = vpop.eup %728  ;;  %v431_v28 = vadd.f32 1.0, %v727_v20 }
 0x15d   : > { %v731_v29 = vpop.eup %730  ;;  %v435_v34 = vadd.f32 1.0, %v729_v22 }
 0x15e   : > { %740 = vrcp.f32 %v431_v28  ;;  %v432_v36 = vadd.f32 1.0, %v731_v29 }
 0x15f   : > { %742 = vrcp.f32 %v435_v34 }
 0x160   : > { %v733_v39 = vpop.eup %732  ;;  %744 = vrcp.f32 %v432_v36 }
 0x161   : > { %v735_v42 = vpop.eup %734  ;;  %v464_v43 = vmul.f32 %v733_v39, %v457_v37 }
 0x162   : > { %v737_v46 = vpop.eup %736  ;;  %v468_v47 = vmul.f32 %v735_v42, %v461_v40 }
 0x163   : > { %v739_v49 = vpop.eup %738  ;;  %v471_v50 = vadd.f32 %v464_v43, %v1009_v23  ;;  %v465_v51 = vmul.f32 %v737_v46, %v458_v44  ;;  %v463_v23 = vsub.f32 %v456_v55, %v1026_v32 }
 0x164   : > { %v475_v53 = vadd.f32 %v468_v47, %v1014_v26  ;;  %v469_v54 = vmul.f32 %v739_v49, %v462_v48  ;;  %v460_v26 = vsub.f32 %v453_v57, %v1024_v31 }
 0x165   : > { %478 = vst [vmem:[#allocation2] sm:$0xff] %v471_v50  ;;  %v472_v56 = vadd.f32 %v465_v51, %v1011_v24 }
 0x166   : > { %482 = vst [vmem:[#allocation2 + $0x20] sm:$0xff] %v475_v53  ;;  %v476_v58 = vadd.f32 %v469_v54, %v1016_v27 }
 0x167   : > { %479 = vst [vmem:[#allocation2 + $0x8] sm:$0xff] %v472_v56 }
 0x168   : > { %v741_v60 = vpop.eup %740  ;;  %483 = vst [vmem:[#allocation2 + $0x28] sm:$0xff] %v476_v58 }
 0x169   : > { %v743_v61 = vpop.eup %742  ;;  %v466_v62 = vmul.f32 %v741_v60, %v459_v59  ;;  %488 = sbr.rel (%p615_p6) target bundleno = 376 (0x178), region = 48 }
 0x16a   : > { %v745_v63 = vpop.eup %744  ;;  %v470_v0 = vmul.f32 %v743_v61, %v463_v23 }
 0x16b   : > { %v473_v1 = vadd.f32 %v466_v62, %v1022_v30  ;;  %v467_v24 = vmul.f32 %v745_v63, %v460_v26 }
 0x16c   : > { %v477_v2 = vadd.f32 %v470_v0, %v1026_v32  ;;  %v489_v3 = vld [vmem:[#allocation2] sm:$0xff] (!%p615_p6) }
 0x16d   : > { %480 = vst [vmem:[#allocation2 + $0x10] sm:$0xff] %v473_v1  ;;  %v474_v27 = vadd.f32 %v467_v24, %v1024_v31  ;;  %496 = vst [vmem:[#allocation8] sm:$0xff] (!%p615_p6), %v489_v3  ;;  %v493_v7 = vld [vmem:[#allocation2 + $0x20] sm:$0xff] (!%p615_p6) }
 0x16e   : > { %484 = vst [vmem:[#allocation2 + $0x30] sm:$0xff] %v477_v2  ;;  %v490_v4 = vld [vmem:[#allocation2 + $0x8] sm:$0xff] (!%p615_p6)  ;;  %500 = vst [vmem:[#allocation8 + $0x20] sm:$0xff] (!%p615_p6), %v493_v7 }
 0x16f   : > { %481 = vst [vmem:[#allocation2 + $0x18] sm:$0xff] %v474_v27  ;;  %497 = vst [vmem:[#allocation8 + $0x8] sm:$0xff] (!%p615_p6), %v490_v4  ;;  %v494_v30 = vld [vmem:[#allocation2 + $0x28] sm:$0xff] (!%p615_p6) }
 0x170   : > { %501 = vst [vmem:[#allocation8 + $0x28] sm:$0xff] %v494_v30 }
 0x174   : > { %v491_v5 = vld [vmem:[#allocation2 + $0x10] sm:$0xff] }
 0x175   : > { %498 = vst [vmem:[#allocation8 + $0x10] sm:$0xff] %v491_v5  ;;  %v495_v32 = vld [vmem:[#allocation2 + $0x30] sm:$0xff] }
 0x176   : > { %v492_v6 = vld [vmem:[#allocation2 + $0x18] sm:$0xff]  ;;  %502 = vst [vmem:[#allocation8 + $0x30] sm:$0xff] %v495_v32 }
 0x177   : > { %499 = vst [vmem:[#allocation8 + $0x18] sm:$0xff] %v492_v6 }
 0x178 PF: > { %p1053_p4 = scmp.eq.s32.totalorder %s581_s15, 1  ;;  %s869_s30 = smov [#allocation8]  }
 0x179   : > { %s512_s4 = sshll.u32 %s869_s30, 4  ;;  %s513_s4 = int_to_ptr.vmem [resolvable:$true] %s512_s4 }
 0x17a   : > { %s802_s5 = scalar_lea.vmem %s513_s4, 896  ;;  %p809_p12 = scmp.lt.s32.totalorder %s513_s4, %s513_s4 }
 0x17b   : > { %p803_p9 = scmp.ne.s32.totalorder %s513_s4, %s802_s5  ;;  %p810_p13 = scmp.lt.s32.totalorder %s802_s5, %s802_s5 }
 0x17d   : > { %p804_p10 = pnand %p803_p9, %p1053_p4  ;;  %p811_p0 = por %p810_p13, %p809_p12 }
 0x17f   : > { %p805_p11 = pneg %p804_p10 }
 0x181   : > { %p812_p1 = pnand %p811_p0, %p805_p11 }
 0x183   : > { %815 = shalt.err (!%p812_p1)
}
 0x184   : > { %s816_s15 = scalar_lea.hbm %s1091_s3, 896 }
 0x185   : > { %p817_p2 = scmp.ne.s32.totalorder %s1091_s3, %s816_s15  ;;  %p822_p3 = scmp.lt.u32.totalorder %s816_s15, %s1091_s3 }
 0x187   : > { %p818_p5 = pnand %p817_p2, %p1053_p4 }
 0x189   : > { %p819_p7 = pneg %p818_p5 }
 0x18b   : > { %p824_p8 = pnand %p822_p3, %p819_p7 }
 0x18d   : > { %827 = shalt.err (!%p824_p8)
}
 0x18e   : > { %s870_s19 = smov 128   ;;  %s871_s22 = smov 8  }
 0x18f   : > { %646 = dma.vmem_to_hbm [thread:$0]  (%p1053_p4), %s513_s4, 896, %s1091_s3, [#allocation5], %s870_s19, %s870_s19, %s871_s22  }
 0x190   : > { %849 = dma.done.wait (%p1053_p4), [#allocation5], 896  }
 0x191   : > { %851 = vsyncadd (%p1053_p4), [#allocation5], 4294966400 }
 0x192 PF: > { %s16_s14 = sadd.s32 1, %s862_s14   ;;  %s1101_s12 = smov %s858_s13 }
 0x193   : > { %p13_p6 = scmp.ge.s32.totalorder %s16_s14, 4   ;;  %s1102_s13 = smov %s1104_s16 }
 0x195   :  { %15 = sbr.rel (!%p13_p6) target bundleno = 4 (0x4), region = 77 }
 0x19c   :  { %528 = vsyncpa [#allocation4], 1 }
 0x19d   :  { %530 = vsyncpa [#allocation4 + $0x1], 1 }
 0x19e   :  { %531 = vsyncpa [#allocation7], 1 }
 0x19f   :  { %532 = vsyncpa [#allocation5], 1 }
 0x1a0   :  { %534 = vsyncpa [#allocation5 + $0x1], 1 }

</bundles_post_ra>
